<compile_context>
chip_gen: v6e
topology: v6e:2x2x1
jax: 0.10.0
libtpu: 0.0.40
codegen_flags: <defaults>
</compile_context>

<pallas_src>
import jax
import jax.numpy as jnp
from jax.experimental import pallas as pl
from jax.experimental.pallas import tpu as pltpu


def _round_up(v, m):
    return ((v + m - 1) // m) * m


# Keep the whole working set comfortably below v5e's 16 MiB default scoped VMEM
# (v6e: 32 MiB, v7x: 32 of 64 MiB), so no vmem_limit_bytes override is needed.
_VMEM_BUDGET_BYTES = 12 * 1024 * 1024


def _fusion_kernel(x_ref, y_ref, z_ref, wx_ref, wy_ref, wz_ref, b_ref, out_ref):
    # One (TM, O_pad) output tile = [x | y | z] @ [Wx; Wy; Wz] + b, computed as
    # the sum of three MXU matmuls so the concat is never materialized. The
    # weight/bias refs are VMEM-resident (constant index_map), only the
    # activation and output tiles stream per grid step.
    acc = jnp.dot(x_ref[...], wx_ref[...], preferred_element_type=jnp.float32)
    acc = acc + jnp.dot(y_ref[...], wy_ref[...], preferred_element_type=jnp.float32)
    acc = acc + jnp.dot(z_ref[...], wz_ref[...], preferred_element_type=jnp.float32)
    out_ref[...] = (acc + b_ref[...]).astype(out_ref.dtype)


def concat_fusion3_prepare(w, b, dx, dy, dz):
    """One-time parameter prep (hoisted out of the per-forward path).

    w: (O, Dx+Dy+Dz) PyTorch nn.Linear weight, b: (O,) bias.
    Returns pre-transposed, lane-padded (K, O_pad) weight blocks + 2-D bias.
    """
    o, k = w.shape
    assert k == dx + dy + dz, "weight in_features must equal Dx + Dy + Dz"
    o_pad = _round_up(o, 128)
    wt = jnp.transpose(w)                      # (K, O)
    if o_pad != o:
        wt = jnp.pad(wt, ((0, 0), (0, o_pad - o)))
        b = jnp.pad(b, (0, o_pad - o))
    return {
        "wx": wt[:dx],                         # (Dx, O_pad)
        "wy": wt[dx:dx + dy],                  # (Dy, O_pad)
        "wz": wt[dx + dy:],                    # (Dz, O_pad)
        "b2d": b.reshape(1, o_pad),            # (1, O_pad)
        "out_dim": o,
    }


def concat_fusion3_apply(x, y, z, params, *, tm=512):
    """forward(x, y, z) -> (x, y, z, cat(x, y, z) @ W.T + b) with prepared params."""
    wx, wy, wz = params["wx"], params["wy"], params["wz"]
    b2d, o = params["b2d"], params["out_dim"]

    B, dx = x.shape
    dy = y.shape[1]
    dz = z.shape[1]
    k_total = dx + dy + dz
    o_pad = wx.shape[1]
    bytes_el = 4  # fp32

    # --- batch tile selection: multiple of 8, capped by the VMEM budget -------
    # Resident weights + bias (counted x2, conservatively, for buffering).
    weight_bytes = 2 * bytes_el * (k_total * o_pad + o_pad)
    # Double-buffered per-row traffic: activations (K) + output (O_pad).
    per_row_bytes = 2 * bytes_el * (k_total + o_pad)
    avail = max(_VMEM_BUDGET_BYTES - weight_bytes, 8 * per_row_bytes)
    max_tm = max(8, (avail // per_row_bytes) // 8 * 8)

    tm_eff = _round_up(max(1, min(tm, B)), 8)      # multiple of 8 (fixes (8,128) rule)
    tm_eff = max(8, min(tm_eff, max_tm))

    b_pad = _round_up(B, tm_eff)
    xp, yp, zp = x, y, z
    if b_pad != B:
        pad_b = ((0, b_pad - B), (0, 0))
        xp = jnp.pad(x, pad_b)                     # padded rows -> bias rows, sliced off
        yp = jnp.pad(y, pad_b)
        zp = jnp.pad(z, pad_b)

    grid = (b_pad // tm_eff,)

    def act_spec(d):
        return pl.BlockSpec((tm_eff, d), lambda i: (i, 0))

    def resident_spec(rows):
        # Constant block index -> Pallas DMAs this block once and keeps it in VMEM.
        return pl.BlockSpec((rows, o_pad), lambda i: (0, 0))

    flops = 2 * b_pad * k_total * o_pad
    bytes_accessed = bytes_el * (b_pad * k_total + k_total * o_pad + o_pad + b_pad * o_pad)

    out = pl.pallas_call(
        _fusion_kernel,
        out_shape=jax.ShapeDtypeStruct((b_pad, o_pad), x.dtype),
        grid=grid,
        in_specs=[
            act_spec(dx), act_spec(dy), act_spec(dz),
            resident_spec(dx), resident_spec(dy), resident_spec(dz),
            resident_spec(1),                      # bias
        ],
        out_specs=pl.BlockSpec((tm_eff, o_pad), lambda i: (i, 0)),
        compiler_params=pltpu.CompilerParams(
            dimension_semantics=("parallel",)),
        cost_estimate=pl.CostEstimate(
            flops=flops, transcendentals=0, bytes_accessed=bytes_accessed),
    )(xp, yp, zp, wx, wy, wz, b2d)

    out = out[:B, :o]
    return x, y, z, out


def concat_fusion3(x, y, z, w, b, *, tm=512):
    """Convenience one-shot wrapper (prepare + apply). For repeated forwards,
    call concat_fusion3_prepare once and concat_fusion3_apply per step."""
    params = concat_fusion3_prepare(w, b, x.shape[1], y.shape[1], z.shape[1])
    return concat_fusion3_apply(x, y, z, params, tm=tm)


if __name__ == "__main__":
    # Small shapes consistent with the module defaults: input_dim = 512 split as
    # Dx=256, Dy=128, Dz=128 (lane-aligned per the perf review), output_dim=100.
    B, Dx, Dy, Dz, OUT = 16, 256, 128, 128, 100
    IN = Dx + Dy + Dz

    key = jax.random.PRNGKey(0)
    kx, ky, kz, kw, kb = jax.random.split(key, 5)

    x = jax.random.normal(kx, (B, Dx), dtype=jnp.float32)
    y = jax.random.normal(ky, (B, Dy), dtype=jnp.float32)
    z = jax.random.normal(kz, (B, Dz), dtype=jnp.float32)

    # Deterministic nn.Linear-style init: U(-1/sqrt(fan_in), 1/sqrt(fan_in)).
    bound = 1.0 / jnp.sqrt(jnp.float32(IN))
    w = jax.random.uniform(kw, (OUT, IN), dtype=jnp.float32, minval=-bound, maxval=bound)
    bias = jax.random.uniform(kb, (OUT,), dtype=jnp.float32, minval=-bound, maxval=bound)

    # Prepare once (hoisted weight transpose/pad), then run the forward.
    # tm=8 at demo scale so the batch grid axis is actually exercised (grid=(2,));
    # at production batch sizes the default tm=512 keeps the kernel HBM-efficient.
    params = concat_fusion3_prepare(w, bias, Dx, Dy, Dz)
    xr, yr, zr, out = concat_fusion3_apply(x, y, z, params, tm=8)
    jax.block_until_ready(out)

    # Reference check against plain JAX (cat + linear), matching PyTorch semantics.
    ref = jnp.concatenate([x, y, z], axis=1) @ w.T + bias
    assert out.shape == (B, OUT)
    assert jnp.allclose(out, ref, atol=1e-3, rtol=1e-3)
    assert jnp.array_equal(xr, x) and jnp.array_equal(yr, y) and jnp.array_equal(zr, z)

    print("KERNEL_OK")
</pallas_src>

<mosaic_0001>
module attributes {stable_mosaic.version = 11 : i64} {
  func.func @_fusion_kernel(%arg0: i32, %arg1: memref<8x256xf32, #tpu.memory_space<vmem>>, %arg2: memref<8x128xf32, #tpu.memory_space<vmem>>, %arg3: memref<8x128xf32, #tpu.memory_space<vmem>>, %arg4: memref<256x128xf32, #tpu.memory_space<vmem>>, %arg5: memref<128x128xf32, #tpu.memory_space<vmem>>, %arg6: memref<128x128xf32, #tpu.memory_space<vmem>>, %arg7: memref<1x128xf32, #tpu.memory_space<vmem>>, %arg8: memref<8x128xf32, #tpu.memory_space<vmem>>) attributes {dimension_semantics = [#tpu.dimension_semantics<parallel>], iteration_bounds = array<i64: 2>, scalar_prefetch = 0 : i64, scratch_operands = 0 : i64, tpu.core_type = #tpu.core_type<tc>, window_params = [{transform_indices = @transform_0, window_bounds = array<i64: 8, 256>}, {transform_indices = @transform_1, window_bounds = array<i64: 8, 128>}, {transform_indices = @transform_2, window_bounds = array<i64: 8, 128>}, {pipeline_mode = #tpu.pipeline_mode<synchronous>, transform_indices = @transform_3, window_bounds = array<i64: 256, 128>}, {pipeline_mode = #tpu.pipeline_mode<synchronous>, transform_indices = @transform_4, window_bounds = array<i64: 128, 128>}, {pipeline_mode = #tpu.pipeline_mode<synchronous>, transform_indices = @transform_5, window_bounds = array<i64: 128, 128>}, {pipeline_mode = #tpu.pipeline_mode<synchronous>, transform_indices = @transform_6, window_bounds = array<i64: 1, 128>}, {transform_indices = @transform_7, window_bounds = array<i64: 8, 128>}]} {
    %c0 = arith.constant 0 : index
    %c0_0 = arith.constant 0 : index
    %0 = vector.load %arg1[%c0, %c0_0] : memref<8x256xf32, #tpu.memory_space<vmem>>, vector<8x256xf32>
    %c0_1 = arith.constant 0 : index
    %c0_2 = arith.constant 0 : index
    %1 = vector.load %arg4[%c0_1, %c0_2] : memref<256x128xf32, #tpu.memory_space<vmem>>, vector<256x128xf32>
    %cst = arith.constant dense<0.000000e+00> : vector<8x128xf32>
    %2 = tpu.matmul %0, %1, %cst {dimension_numbers = #tpu.dot_dimension_numbers<[1], [0], [0], [1], [0, 0, 1, 1], [], []>} : vector<8x256xf32>, vector<256x128xf32>, vector<8x128xf32> -> vector<8x128xf32>
    %c0_3 = arith.constant 0 : index
    %c0_4 = arith.constant 0 : index
    %3 = vector.load %arg2[%c0_3, %c0_4] : memref<8x128xf32, #tpu.memory_space<vmem>>, vector<8x128xf32>
    %c0_5 = arith.constant 0 : index
    %c0_6 = arith.constant 0 : index
    %4 = vector.load %arg5[%c0_5, %c0_6] : memref<128x128xf32, #tpu.memory_space<vmem>>, vector<128x128xf32>
    %cst_7 = arith.constant dense<0.000000e+00> : vector<8x128xf32>
    %5 = tpu.matmul %3, %4, %cst_7 {dimension_numbers = #tpu.dot_dimension_numbers<[1], [0], [0], [1], [0, 0, 1, 1], [], []>} : vector<8x128xf32>, vector<128x128xf32>, vector<8x128xf32> -> vector<8x128xf32>
    %6 = arith.addf %2, %5 : vector<8x128xf32>
    %c0_8 = arith.constant 0 : index
    %c0_9 = arith.constant 0 : index
    %7 = vector.load %arg3[%c0_8, %c0_9] : memref<8x128xf32, #tpu.memory_space<vmem>>, vector<8x128xf32>
    %c0_10 = arith.constant 0 : index
    %c0_11 = arith.constant 0 : index
    %8 = vector.load %arg6[%c0_10, %c0_11] : memref<128x128xf32, #tpu.memory_space<vmem>>, vector<128x128xf32>
    %cst_12 = arith.constant dense<0.000000e+00> : vector<8x128xf32>
    %9 = tpu.matmul %7, %8, %cst_12 {dimension_numbers = #tpu.dot_dimension_numbers<[1], [0], [0], [1], [0, 0, 1, 1], [], []>} : vector<8x128xf32>, vector<128x128xf32>, vector<8x128xf32> -> vector<8x128xf32>
    %10 = arith.addf %6, %9 : vector<8x128xf32>
    %c0_13 = arith.constant 0 : index
    %c0_14 = arith.constant 0 : index
    %11 = vector.load %arg7[%c0_13, %c0_14] : memref<1x128xf32, #tpu.memory_space<vmem>>, vector<1x128xf32>
    %12 = vector.broadcast %11 : vector<1x128xf32> to vector<8x128xf32>
    %13 = arith.addf %10, %12 : vector<8x128xf32>
    %c0_15 = arith.constant 0 : index
    %c0_16 = arith.constant 0 : index
    %14 = vector.load %arg8[%c0_15, %c0_16] : memref<8x128xf32, #tpu.memory_space<vmem>>, vector<8x128xf32>
    tpu.vector_store %arg8[%c0_15, %c0_16], %13 {strides = array<i32>} : memref<8x128xf32, #tpu.memory_space<vmem>>, vector<8x128xf32>,
    return
  }
  func.func @transform_0(%arg0: i32) -> (i32, i32) {
    %c0_i32 = arith.constant 0 : i32
    %c0_i32_0 = arith.constant 0 : i32
    return %arg0, %c0_i32 : i32, i32
  }
  func.func @transform_1(%arg0: i32) -> (i32, i32) {
    %c0_i32 = arith.constant 0 : i32
    %c0_i32_0 = arith.constant 0 : i32
    return %arg0, %c0_i32 : i32, i32
  }
  func.func @transform_2(%arg0: i32) -> (i32, i32) {
    %c0_i32 = arith.constant 0 : i32
    %c0_i32_0 = arith.constant 0 : i32
    return %arg0, %c0_i32 : i32, i32
  }
  func.func @transform_3(%arg0: i32) -> (i32, i32) {
    %c0_i32 = arith.constant 0 : i32
    %c0_i32_0 = arith.constant 0 : i32
    %c0_i32_1 = arith.constant 0 : i32
    return %c0_i32, %c0_i32_0 : i32, i32
  }
  func.func @transform_4(%arg0: i32) -> (i32, i32) {
    %c0_i32 = arith.constant 0 : i32
    %c0_i32_0 = arith.constant 0 : i32
    %c0_i32_1 = arith.constant 0 : i32
    return %c0_i32, %c0_i32_0 : i32, i32
  }
  func.func @transform_5(%arg0: i32) -> (i32, i32) {
    %c0_i32 = arith.constant 0 : i32
    %c0_i32_0 = arith.constant 0 : i32
    %c0_i32_1 = arith.constant 0 : i32
    return %c0_i32, %c0_i32_0 : i32, i32
  }
  func.func @transform_6(%arg0: i32) -> (i32, i32) {
    %c0_i32 = arith.constant 0 : i32
    %c0_i32_0 = arith.constant 0 : i32
    %c0_i32_1 = arith.constant 0 : i32
    return %c0_i32, %c0_i32_0 : i32, i32
  }
  func.func @transform_7(%arg0: i32) -> (i32, i32) {
    %c0_i32 = arith.constant 0 : i32
    %c0_i32_0 = arith.constant 0 : i32
    return %arg0, %c0_i32 : i32, i32
  }
}

</mosaic_0001>

<bundles_post_ra>
// kernel: tpu_custom_call.1
= control target key start
LH: loop header
LB: loop body
LE: loop exit
PB: predicated region body
PF: predicated region fallthrough
CT: control target
= control target key end

     0   :  { %s1721_s0 = inlined_call_operand.hbm [shape: f32[16,256], index: 0, kind: input, shape index: {}]   ;;  %s1722_s1 = inlined_call_operand.hbm [shape: f32[16,128], index: 1, kind: input, shape index: {}]   ;;  %s1723_s2 = inlined_call_operand.hbm [shape: f32[16,128], index: 2, kind: input, shape index: {}]   ;;  %s1724_s3 = inlined_call_operand.hbm [shape: f32[256,128], index: 3, kind: input, shape index: {}]   ;;  %s1725_s4 = inlined_call_operand.hbm [shape: f32[128,128], index: 4, kind: input, shape index: {}]   ;;  %s1726_s5 = inlined_call_operand.hbm [shape: f32[128,128], index: 5, kind: input, shape index: {}]   ;;  %s1727_s6 = inlined_call_operand.vmem [shape: f32[1,128], index: 6, kind: input, shape index: {}]   ;;  %s1728_s7 = inlined_call_operand.hbm [shape: f32[16,128], index: 7, kind: output, shape index: {}]  }
   0x1   :  { %1746 = sst [smem:[#allocation23_spill]] %s1722_s1 }
   0x2   :  { %1747 = sst [smem:[#allocation24_spill]] %s1724_s3 }
   0x3   :  { %1748 = sst [smem:[#allocation25_spill]] %s1725_s4 }
   0x4   :  { %12 = vsyncpa [#allocation3], 0 }
   0x5   :  { %14 = vsyncpa [#allocation3 + $0x1], 0 }
   0x6   :  { %15 = vsyncpa [#allocation6], 0 }
   0x7   :  { %17 = vsyncpa [#allocation6 + $0x1], 0 }
   0x8   :  { %18 = vsyncpa [#allocation9], 0 }
   0x9   :  { %19 = vsyncpa [#allocation12], 0 }
   0xa   :  { %20 = vsyncpa [#allocation4], 0 }
   0xb   :  { %22 = vsyncpa [#allocation4 + $0x1], 0  ;;  %s1402_s24 = smov 0   ;;  %s1404_s25 = smov 0  }
   0xc   :  { %s1406_s26 = smov 0   ;;  %s1408_s27 = smov 0  }
   0xd LB: > { %1749 = sst [smem:[#allocation19_spill]] %s1345_s26  ;;  %s1423_s28 = sadd.s32 4294967295, %s1349_s27   ;;  %s1349_s27 = sphi %s1408_s27, %s1780_s27   ;;  %s1345_s26 = sphi %s1406_s26, %s1782_s26   ;;  %s1341_s25 = sphi %s1404_s25, %s1784_s25   ;;  %s1337_s24 = sphi %s1402_s24, %s1783_s24  }
   0xe   : > { %s854_s29 = sadd.s32 4294967294, %s1349_s27   ;;  %p48_p0 = scmp.ne.s32.totalorder %s1341_s25, %s1337_s24 }
   0xf   : > { %p1735_p1 = scmp.eq.s32.totalorder %s1423_s28, 0  ;;  %p208_p2 = scmp.eq.s32.totalorder %s1423_s28, 1 }
  0x10   : > { %p214_p3 = scmp.eq.s32.totalorder %s854_s29, 1  ;;  %p855_p5 = scmp.ge.s32.totalorder %s1349_s27, 1 }
  0x11   : > { %p1432_p4 = por %p1735_p1, %p48_p0  ;;  %p221_p7 = scmp.lt.s32.totalorder %s1349_s27, 3 }
  0x12   : > { %p1437_p6 = por %p214_p3, %p48_p0  ;;  %s1351_s10 = smov [#allocation8]  }
  0x13   : > { %s1750_s30 = scalar_select %p1432_p4, 1, 0 }
  0x14   : > { %s1751_s8 = scalar_select %p1437_p6, 1, 0 }
  0x15   : > { %p1442_p8 = pnand %p855_p5, %p221_p7  ;;  %s233_s11 = sshll.u32 %s1351_s10, 4  ;;  %s234_s11 = int_to_ptr.vmem [resolvable:$true] %s233_s11 }
  0x16   : > { %1752 = sst [smem:[#allocation20_spill]] %s1751_s8  ;;  %s1456_s13 = sadd.s32 1, %s1349_s27  }
  0x17   : > { %s1753_s9 = scalar_select %p1442_p8, 1, 0 }
  0x18   : > { %p1040_p9 = pneg %p1442_p8  ;;  %1755 = sst [smem:[#allocation21_spill]] %s1456_s13 }
  0x19   : > { %s35_s14 = sadd.s32 1, %s1345_s26  ;;  %s32_s15 = ssub.s32 %s1349_s27, %s1456_s13 }
  0x1a   : > { %p1451_p11 = pnand %p1040_p9, %p1735_p1  ;;  %s1122_s16 = scalar_lea.vmem %s234_s11, 4096 }
  0x1b   : > { %p1123_p13 = scmp.ne.s32.totalorder %s234_s11, %s1122_s16  ;;  %p1130_p5 = scmp.lt.s32.totalorder %s234_s11, %s234_s11 }
  0x1c   : > { %s1754_s12 = scalar_select %p1451_p11, 1, 0 }
  0x1d   : > { %p1736_p12 = pneg %p1451_p11  ;;  %p1131_p7 = scmp.lt.s32.totalorder %s1122_s16, %s1122_s16 }
  0x1f   : > { %p1125_p0 = pnand %p1123_p13, %p1736_p12  ;;  %p1132_p9 = por %p1131_p7, %p1130_p5 }
  0x21   : > { %p1126_p3 = pneg %p1125_p0 }
  0x23   : > { %p1133_p10 = pnand %p1132_p9, %p1126_p3 }
  0x25   : > { %1136 = shalt.err (!%p1133_p10)
}
  0x26   : > { %s1729_s17 = smov 128   ;;  %s1731_s18 = smov 8  }
  0x27   : > { %s1756_s3 = sld [smem:[#allocation24_spill]]  ;;  %p33_p10 = scmp.eq.s32.totalorder %s32_s15, 0 }
  0x28   : > { %p42_p13 = scmp.ne.s32.totalorder %s1345_s26, %s1341_s25  ;;  %p43_p0 = scmp.eq.s32.totalorder %s1349_s27, 0 }
  0x29   : > { %p1067_p3 = scmp.lt.s32.totalorder %s1349_s27, 2  ;;  %s1488_s23 = sand.u32 1, %s1345_s26  }
  0x2a   : > { %s1479_s21 = scalar_select %p33_p10, %s1345_s26, %s35_s14  }
  0x2b   : > { %p44_p5 = por %p43_p0, %p42_p13  ;;  %p1483_p7 = por %p208_p2, %p42_p13 }
  0x2c   : > { %1757 = sst [smem:[#allocation22_spill]] %s1479_s21  ;;  %s295_s29 = sand.u32 1, %s1349_s27  }
  0x2d   : > { %1043 = dma.hbm_to_vmem [thread:$0]  (!%p1451_p11), %s1756_s3, 4096, %s234_s11, [#allocation9], %s1729_s17, %s1729_s17, %s1731_s18  }
  0x2e   : > { %s1758_s22 = scalar_select %p1483_p7, 1, 0 }
  0x2f   : > { %p1491_p9 = pnand %p1067_p3, %p44_p5  ;;  %s1734_s11 = sshll.u32 %s1488_s23, 3 }
  0x30   : > { %s1733_s15 = sshll.u32 %s1349_s27, 7  ;;  %s1760_s1 = sld [smem:[#allocation23_spill]] }
  0x31   : > { %s299_s20 = scalar_lea.vmem [#allocation5], %s1734_s11  ;;  %s1506_s18 = scalar_lea.sflag [#allocation6], %s295_s29 }
  0x32   : > { %s306_s17 = sshll.u32 %s299_s20, 4  ;;  %p1512_p10 = pneg %p1491_p9  ;;  %s307_s17 = int_to_ptr.vmem [resolvable:$true] %s306_s17 }
  0x36   : > { %s1502_s19 = scalar_lea.hbm %s1760_s1, %s1733_s15  ;;  %s1142_s15 = scalar_lea.hbm %s1760_s1, 256 }
  0x37   : > { %s1137_s3 = scalar_lea.hbm %s1502_s19, 128  ;;  %p1143_p3 = scmp.lt.s32.totalorder %s1502_s19, %s1760_s1 }
  0x38   : > { %p1138_p2 = scmp.ne.s32.totalorder %s1502_s19, %s1137_s3  ;;  %p1144_p5 = scmp.lt.s32.totalorder %s1142_s15, %s1137_s3 }
  0x3a   : > { %p1140_p13 = pnand %p1512_p10, %p1138_p2  ;;  %p1145_p1 = por %p1144_p5, %p1143_p3 }
  0x3c   : > { %p1141_p0 = pneg %p1140_p13 }
  0x3e   : > { %p1146_p12 = pnand %p1145_p1, %p1141_p0 }
  0x40   : > { %1149 = shalt.err (!%p1146_p12)
}
  0x41   : > { %s1150_s29 = scalar_lea.vmem %s307_s17, 128  ;;  %s1354_s26 = smov [#allocation5]  }
  0x42   : > { %p1151_p6 = scmp.ne.s32.totalorder %s307_s17, %s1150_s29  ;;  %s1155_s13 = sshll.u32 %s1354_s26, 4  ;;  %s1156_s13 = int_to_ptr.vmem [resolvable:$false] %s1155_s13 }
  0x43   : > { %s1157_s8 = scalar_lea.vmem %s1156_s13, 256  ;;  %p1158_p2 = scmp.lt.s32.totalorder %s307_s17, %s1156_s13 }
  0x44   : > { %p1153_p7 = pnand %p1151_p6, %p1512_p10  ;;  %p1159_p13 = scmp.lt.s32.totalorder %s1157_s8, %s1150_s29 }
  0x46   : > { %p1154_p4 = pneg %p1153_p7  ;;  %p1160_p8 = por %p1159_p13, %p1158_p2 }
  0x48   : > { %p1161_p11 = pnand %p1160_p8, %p1154_p4 }
  0x4a   : > { %1164 = shalt.err (!%p1161_p11)
}
  0x4b   : > { %1056 = dma.hbm_to_vmem [thread:$0]  (!%p1491_p9), %s1502_s19, 128, %s307_s17, %s1506_s18  }
  0x4c   : > { %s1762_s3 = sshll.u32 %s1349_s27, 7  ;;  %s1355_s26 = smov [#allocation10]  }
  0x4d   : > { %s1536_s14 = scalar_lea.hbm %s1723_s2, %s1762_s3  ;;  %s246_s16 = sshll.u32 %s1355_s26, 4  ;;  %s247_s16 = int_to_ptr.vmem [resolvable:$true] %s246_s16 }
  0x4e   : > { %s1356_s8 = smov [#allocation11]   ;;  %s1176_s20 = scalar_lea.vmem %s247_s16, 2048 }
  0x4f   : > { %s259_s13 = sshll.u32 %s1356_s8, 4  ;;  %p1177_p1 = scmp.ne.s32.totalorder %s247_s16, %s1176_s20  ;;  %s260_s13 = int_to_ptr.vmem [resolvable:$true] %s259_s13 }
  0x50   : > { %p1763_p4 = scmp.ne.s32.totalorder %s1754_s12, 0  ;;  %p1184_p12 = scmp.lt.s32.totalorder %s247_s16, %s247_s16 }
  0x51   : > { %p1185_p7 = scmp.lt.s32.totalorder %s1176_s20, %s1176_s20 }
  0x52   : > { %p1764_p6 = pneg %p1763_p4 }
  0x53   : > { %p1186_p0 = por %p1185_p7, %p1184_p12 }
  0x54   : > { %p1179_p8 = pnand %p1177_p1, %p1764_p6 }
  0x56   : > { %p1180_p11 = pneg %p1179_p8 }
  0x58   : > { %p1187_p3 = pnand %p1186_p0, %p1180_p11 }
  0x5a   : > { %1190 = shalt.err (!%p1187_p3)
}
  0x5b   : > { %s1765_s17 = smov 8   ;;  %s1766_s19 = smov 128  }
  0x5c   : > { %s1767_s4 = sld [smem:[#allocation25_spill]]  ;;  %s1202_s11 = scalar_lea.vmem %s260_s13, 2048 }
  0x5d   : > { %p1203_p5 = scmp.ne.s32.totalorder %s260_s13, %s1202_s11  ;;  %p1768_p2 = pmov %p1764_p6 }
  0x5e   : > { %p1210_p6 = scmp.lt.s32.totalorder %s260_s13, %s260_s13  ;;  %p1211_p8 = scmp.lt.s32.totalorder %s1202_s11, %s1202_s11 }
  0x5f   : > { %p1205_p13 = pnand %p1203_p5, %p1768_p2 }
  0x60   : > { %p1212_p11 = por %p1211_p8, %p1210_p6 }
  0x61   : > { %p1206_p1 = pneg %p1205_p13 }
  0x62   : > { %1046 = dma.hbm_to_vmem [thread:$0]  (!%p1763_p4), %s1767_s4, 2048, %s247_s16, [#allocation9], %s1766_s19, %s1766_s19, %s1765_s17  }
  0x63   : > { %p1213_p12 = pnand %p1212_p11, %p1206_p1 }
  0x65   : > { %1216 = shalt.err (!%p1213_p12)
}
  0x66   : > { %1049 = dma.hbm_to_vmem [thread:$0]  (!%p1763_p4), %s1726_s5, 2048, %s260_s13, [#allocation12], %s1766_s19, %s1766_s19, %s1765_s17  }
  0x67   : > { %s860_s16 = sshll.u32 %s1488_s23, 4  ;;  %s880_s8 = sshll.u32 %s1349_s27, 8 }
  0x68   : > { %s1565_s3 = scalar_lea.hbm %s1721_s0, %s880_s8  ;;  %s280_s12 = scalar_lea.vmem [#allocation2], %s860_s16 }
  0x69   : > { %s288_s11 = sshll.u32 %s280_s12, 4  ;;  %s1769_s1 = sshll.u32 %s1488_s23, 3  ;;  %s289_s11 = int_to_ptr.vmem [resolvable:$true] %s288_s11 }
  0x6a   : > { %s317_s15 = scalar_lea.vmem [#allocation7], %s1769_s1  ;;  %s277_s4 = scalar_lea.sflag [#allocation3], %s1488_s23 }
  0x6b   : > { %s324_s26 = sshll.u32 %s317_s15, 4  ;;  %s1217_s13 = scalar_lea.hbm %s1565_s3, 256  ;;  %s1569_s26 = int_to_ptr.vmem [resolvable:$true] %s324_s26 }
  0x6c   : > { %p1218_p4 = scmp.ne.s32.totalorder %s1565_s3, %s1217_s13  ;;  %s1222_s8 = scalar_lea.hbm %s1721_s0, 512 }
  0x6d   : > { %p1223_p3 = scmp.lt.s32.totalorder %s1565_s3, %s1721_s0  ;;  %p1224_p5 = scmp.lt.s32.totalorder %s1222_s8, %s1217_s13 }
  0x6e   : > { %p1220_p7 = pnand %p1218_p4, %p1512_p10 }
  0x6f   : > { %p1225_p2 = por %p1224_p5, %p1223_p3 }
  0x70   : > { %p1221_p0 = pneg %p1220_p7 }
  0x72   : > { %p1226_p13 = pnand %p1225_p2, %p1221_p0 }
  0x74   : > { %1229 = shalt.err (!%p1226_p13)
}
  0x75   : > { %s1230_s1 = scalar_lea.vmem %s289_s11, 256  ;;  %s1357_s23 = smov [#allocation2]  }
  0x76   : > { %p1231_p1 = scmp.ne.s32.totalorder %s289_s11, %s1230_s1  ;;  %s1235_s16 = sshll.u32 %s1357_s23, 4  ;;  %s1236_s16 = int_to_ptr.vmem [resolvable:$false] %s1235_s16 }
  0x77   : > { %s1237_s12 = scalar_lea.vmem %s1236_s16, 512  ;;  %p1238_p11 = scmp.lt.s32.totalorder %s289_s11, %s1236_s16 }
  0x78   : > { %p1233_p6 = pnand %p1231_p1, %p1512_p10  ;;  %p1239_p12 = scmp.lt.s32.totalorder %s1237_s12, %s1230_s1 }
  0x7a   : > { %p1234_p8 = pneg %p1233_p6  ;;  %p1240_p4 = por %p1239_p12, %p1238_p11 }
  0x7c   : > { %p1241_p7 = pnand %p1240_p4, %p1234_p8 }
  0x7e   : > { %1244 = shalt.err (!%p1241_p7)
}
  0x7f   : > { %1053 = dma.hbm_to_vmem [thread:$0]  (!%p1491_p9), %s1565_s3, 256, %s289_s11, %s277_s4  }
  0x80   : > { %s1245_s15 = scalar_lea.hbm %s1536_s14, 128  ;;  %s1250_s19 = scalar_lea.hbm %s1723_s2, 256 }
  0x81   : > { %p1246_p0 = scmp.ne.s32.totalorder %s1536_s14, %s1245_s15  ;;  %p1251_p2 = scmp.lt.s32.totalorder %s1536_s14, %s1723_s2 }
  0x82   : > { %p1252_p13 = scmp.lt.s32.totalorder %s1250_s19, %s1245_s15 }
  0x83   : > { %p1248_p3 = pnand %p1246_p0, %p1512_p10 }
  0x84   : > { %p1253_p1 = por %p1252_p13, %p1251_p2 }
  0x85   : > { %p1249_p5 = pneg %p1248_p3 }
  0x87   : > { %p1254_p6 = pnand %p1253_p1, %p1249_p5 }
  0x89   : > { %1257 = shalt.err (!%p1254_p6)
}
  0x8a   : > { %s1258_s4 = scalar_lea.vmem %s1569_s26, 128  ;;  %s1358_s3 = smov [#allocation7]  }
  0x8b   : > { %p1259_p8 = scmp.ne.s32.totalorder %s1569_s26, %s1258_s4  ;;  %s1263_s11 = sshll.u32 %s1358_s3, 4  ;;  %s1264_s11 = int_to_ptr.vmem [resolvable:$false] %s1263_s11 }
  0x8c   : > { %s1265_s29 = scalar_lea.vmem %s1264_s11, 256  ;;  %p1266_p4 = scmp.lt.s32.totalorder %s1569_s26, %s1264_s11 }
  0x8d   : > { %p1261_p11 = pnand %p1259_p8, %p1512_p10  ;;  %p1267_p7 = scmp.lt.s32.totalorder %s1265_s29, %s1258_s4 }
  0x8f   : > { %p1262_p12 = pneg %p1261_p11  ;;  %p1268_p0 = por %p1267_p7, %p1266_p4 }
  0x91   : > { %p1269_p3 = pnand %p1268_p0, %p1262_p12 }
  0x93   : > { %1272 = shalt.err (!%p1269_p3)
}
  0x94   : > { %1059 = dma.hbm_to_vmem [thread:$0]  (!%p1491_p9), %s1536_s14, 128, %s1569_s26, %s1506_s18  }
  0x95   : > { %p1770_p5 = scmp.ne.s32.totalorder %s1753_s9, 0 }
  0x96   : > { %s1612_s21 = sand.u32 (!%p1770_p5), 1, %s1341_s25   ;;  %p1771_p10 = scmp.ne.s32.totalorder (!%p1770_p5), %s1750_s30, 0 }
  0x97   : > { %333 = sbr.rel (%p1770_p5) target bundleno = 443 (0x1bb), region = 48  ;;  %s868_s1 = sshll.u32 (!%p1770_p5), %s1612_s21, 4 }
  0x98   : > { %s336_s23 = scalar_lea.sflag (!%p1770_p5), [#allocation3], %s1612_s21  ;;  %s1616_s16 = scalar_lea.vmem (!%p1770_p5), [#allocation2], %s868_s1 }
  0x9c   : > { %1316 = dma.done.wait (%p1771_p10), %s336_s23, 256  }
  0x9d   : > { %1318 = vsyncadd (%p1771_p10), %s336_s23, 4294967040  ;;  %s344_s9 = sand.u32 1, %s1423_s28   ;;  %s1624_s18 = sshll.u32 %s1612_s21, 3 }
  0x9e   : > { %s345_s10 = scalar_lea.sflag [#allocation6], %s344_s9  ;;  %s348_s14 = scalar_lea.vmem [#allocation5], %s1624_s18 }
  0x9f   : > { %1320 = dma.done.wait (%p1771_p10), %s345_s10, 256  }
  0xa0   : > { %1322 = vsyncadd (%p1771_p10), %s345_s10, 4294967040  ;;  %s357_s26 = scalar_lea.vmem [#allocation7], %s1624_s18  ;;  %p1772_p9 = scmp.eq.s32.totalorder %s1423_s28, 0 }
  0xa2   : > { %1324 = dma.done.wait (%p1772_p9), [#allocation9], 6144   ;;  %p1773_p2 = pmov %p1772_p9 }
  0xa4   : > { %1326 = vsyncadd (%p1773_p2), [#allocation9], 4294961152  ;;  %p1774_p13 = pmov %p1773_p2 }
  0xa5   : > { %p1775_p1 = pmov %p1773_p2 }
  0xa6   : > { %1328 = dma.done.wait (%p1774_p13), [#allocation12], 2048  }
  0xa7   : > { %1330 = vsyncadd (%p1775_p1), [#allocation12], 4294965248  ;;  %v1359_v0 = vmov 0.0   ;;  %vm1360_vm0 = vmmov 0   ;;  %v460_v1 = vld [vmem:[#allocation10 + $0x78] sm:$0xff]  ;;  %v459_v4 = vld [vmem:[#allocation10 + $0x70] sm:$0xff] }
  0xa8   : > { %950 = vmatprep.subr.mxu0 %v1359_v0  ;;  %982 = vmatprep.mubr.msk.f32.mxu0 %vm1360_vm0, %v1359_v0  ;;  %v443_v2 = vld [vmem:[#allocation8 + $0xf8] sm:$0xff]  ;;  %v442_v5 = vld [vmem:[#allocation8 + $0xf0] sm:$0xff]  ;;  %v458_v7 = vld [vmem:[#allocation10 + $0x68] sm:$0xff]  ;;  %s877_s15 = sshll.u32 %s1423_s28, 7  ;;  %s409_s13 = scalar_lea.vmem [#allocation13], %s1624_s18 }
  0xa9   : > { %v427_v3 = vld [vmem:[#allocation8 + $0x78] sm:$0xff]  ;;  %951 = vmatpush3.msra.mxu0 %v460_v1  ;;  %898 = vmatprep.subr.mxu1 %v443_v2  ;;  %v426_v6 = vld [vmem:[#allocation8 + $0x70] sm:$0xff]  ;;  %v441_v8 = vld [vmem:[#allocation8 + $0xe8] sm:$0xff]  ;;  %s712_s17 = sshll.u32 %s409_s13, 4  ;;  %s710_s20 = scalar_lea.hbm %s1728_s7, %s877_s15  ;;  %s713_s17 = int_to_ptr.vmem [resolvable:$true] %s712_s17 }
  0xaa   : > { %952 = vmatprep.subr.mxu0 %v1359_v0  ;;  %899 = vmatpush3.msra.mxu1 %v427_v3  ;;  %v425_v9 = vld [vmem:[#allocation8 + $0x68] sm:$0xff]  ;;  %v457_v10 = vld [vmem:[#allocation10 + $0x60] sm:$0xff]  ;;  %v456_v13 = vld [vmem:[#allocation10 + $0x58] sm:$0xff]  ;;  %s699_s4 = scalar_lea.sflag [#allocation4], %s1612_s21  ;;  %s1273_s3 = scalar_lea.vmem %s713_s17, 128 }
  0xab   : > { %953 = vmatpush3.msra.mxu0 %v459_v4  ;;  %900 = vmatprep.subr.mxu1 %v442_v5  ;;  %v440_v11 = vld [vmem:[#allocation8 + $0xe0] sm:$0xff]  ;;  %v439_v14 = vld [vmem:[#allocation8 + $0xd8] sm:$0xff]  ;;  %v455_v16 = vld [vmem:[#allocation10 + $0x50] sm:$0xff]  ;;  %p1274_p6 = scmp.ne.s32.totalorder %s713_s17, %s1273_s3  ;;  %p1776_p8 = scmp.ne.s32.totalorder %s1758_s22, 0 }
  0xac   : > { %954 = vmatprep.subr.mxu0 %v1359_v0  ;;  %901 = vmatpush3.msra.mxu1 %v426_v6  ;;  %v424_v12 = vld [vmem:[#allocation8 + $0x60] sm:$0xff]  ;;  %v423_v15 = vld [vmem:[#allocation8 + $0x58] sm:$0xff]  ;;  %v438_v17 = vld [vmem:[#allocation8 + $0xd0] sm:$0xff]  ;;  %s1361_s11 = smov [#allocation13]  }
  0xad   : > { %955 = vmatpush3.msra.mxu0 %v458_v7  ;;  %902 = vmatprep.subr.mxu1 %v441_v8  ;;  %v422_v18 = vld [vmem:[#allocation8 + $0x50] sm:$0xff]  ;;  %v454_v19 = vld [vmem:[#allocation10 + $0x48] sm:$0xff]  ;;  %v453_v22 = vld [vmem:[#allocation10 + $0x40] sm:$0xff]  ;;  %p1275_p11 = pnand %p1274_p6, %p1776_p8  ;;  %s1277_s29 = sshll.u32 %s1361_s11, 4  ;;  %s1278_s29 = int_to_ptr.vmem [resolvable:$false] %s1277_s29 }
  0xae   : > { %956 = vmatprep.subr.mxu0 %v1359_v0  ;;  %903 = vmatpush3.msra.mxu1 %v425_v9  ;;  %v437_v20 = vld [vmem:[#allocation8 + $0xc8] sm:$0xff]  ;;  %v436_v23 = vld [vmem:[#allocation8 + $0xc0] sm:$0xff]  ;;  %v452_v25 = vld [vmem:[#allocation10 + $0x38] sm:$0xff]  ;;  %s1279_s28 = scalar_lea.vmem %s1278_s29, 256  ;;  %p1280_p4 = scmp.lt.s32.totalorder %s713_s17, %s1278_s29 }
  0xaf   : > { %957 = vmatpush3.msra.mxu0 %v457_v10  ;;  %904 = vmatprep.subr.mxu1 %v440_v11  ;;  %v421_v21 = vld [vmem:[#allocation8 + $0x48] sm:$0xff]  ;;  %v420_v24 = vld [vmem:[#allocation8 + $0x40] sm:$0xff]  ;;  %v435_v26 = vld [vmem:[#allocation8 + $0xb8] sm:$0xff]  ;;  %p1276_p12 = pneg %p1275_p11  ;;  %p1281_p7 = scmp.lt.s32.totalorder %s1279_s28, %s1273_s3 }
  0xb0   : > { %958 = vmatprep.subr.mxu0 %v1359_v0  ;;  %905 = vmatpush3.msra.mxu1 %v424_v12  ;;  %v419_v27 = vld [vmem:[#allocation8 + $0x38] sm:$0xff]  ;;  %v451_v28 = vld [vmem:[#allocation10 + $0x30] sm:$0xff]  ;;  %v450_v31 = vld [vmem:[#allocation10 + $0x28] sm:$0xff] }
  0xb1   : > { %959 = vmatpush3.msra.mxu0 %v456_v13  ;;  %906 = vmatprep.subr.mxu1 %v439_v14  ;;  %v434_v29 = vld [vmem:[#allocation8 + $0xb0] sm:$0xff]  ;;  %v433_v32 = vld [vmem:[#allocation8 + $0xa8] sm:$0xff]  ;;  %v449_v34 = vld [vmem:[#allocation10 + $0x20] sm:$0xff]  ;;  %p1282_p0 = por %p1281_p7, %p1280_p4 }
  0xb2   : > { %960 = vmatprep.subr.mxu0 %v1359_v0  ;;  %907 = vmatpush3.msra.mxu1 %v423_v15  ;;  %v418_v30 = vld [vmem:[#allocation8 + $0x30] sm:$0xff]  ;;  %v417_v33 = vld [vmem:[#allocation8 + $0x28] sm:$0xff]  ;;  %v432_v35 = vld [vmem:[#allocation8 + $0xa0] sm:$0xff] }
  0xb3   : > { %961 = vmatpush3.msra.mxu0 %v455_v16  ;;  %908 = vmatprep.subr.mxu1 %v438_v17  ;;  %v416_v36 = vld [vmem:[#allocation8 + $0x20] sm:$0xff]  ;;  %v448_v37 = vld [vmem:[#allocation10 + $0x18] sm:$0xff]  ;;  %v447_v40 = vld [vmem:[#allocation10 + $0x10] sm:$0xff]  ;;  %p1283_p3 = pnand %p1282_p0, %p1276_p12 }
  0xb4   : > { %962 = vmatprep.subr.mxu0 %v1359_v0  ;;  %909 = vmatpush3.msra.mxu1 %v422_v18  ;;  %v431_v38 = vld [vmem:[#allocation8 + $0x98] sm:$0xff]  ;;  %v430_v41 = vld [vmem:[#allocation8 + $0x90] sm:$0xff]  ;;  %v446_v43 = vld [vmem:[#allocation10 + $0x8] sm:$0xff] }
  0xb5   : > { %963 = vmatpush3.msra.mxu0 %v454_v19  ;;  %910 = vmatprep.subr.mxu1 %v437_v20  ;;  %v415_v39 = vld [vmem:[#allocation8 + $0x18] sm:$0xff]  ;;  %v414_v42 = vld [vmem:[#allocation8 + $0x10] sm:$0xff]  ;;  %v429_v44 = vld [vmem:[#allocation8 + $0x88] sm:$0xff] }
  0xb6   : > { %964 = vmatprep.subr.mxu0 %v1359_v0  ;;  %911 = vmatpush3.msra.mxu1 %v421_v21  ;;  %v413_v45 = vld [vmem:[#allocation8 + $0x8] sm:$0xff]  ;;  %v445_v46 = vld [vmem:[#allocation10] sm:$0xff]  ;;  %v617_v52 = vld [vmem:[#allocation11 + $0x78] sm:$0xff] }
  0xb7   : > { %965 = vmatpush3.msra.mxu0 %v453_v22  ;;  %912 = vmatprep.subr.mxu1 %v436_v23  ;;  %v428_v47 = vld [vmem:[#allocation8 + $0x80] sm:$0xff]  ;;  %v411_v50 = vld [vmem:[%s1616_s16 + $0x8] sm:$0xff]  ;;  %v616_v53 = vld [vmem:[#allocation11 + $0x70] sm:$0xff] }
  0xb8   : > { %966 = vmatprep.subr.mxu0 %v1359_v0  ;;  %913 = vmatpush3.msra.mxu1 %v420_v24  ;;  %v444_v48 = vld [vmem:[%s348_s14] sm:$0xff]  ;;  %v613_v56 = vld [vmem:[#allocation11 + $0x58] sm:$0xff]  ;;  %v612_v57 = vld [vmem:[#allocation11 + $0x50] sm:$0xff] }
  0xb9   : > { %967 = vmatpush3.msra.mxu0 %v452_v25  ;;  %914 = vmatprep.subr.mxu1 %v435_v26  ;;  %v412_v49 = vld [vmem:[#allocation8] sm:$0xff]  ;;  %v615_v54 = vld [vmem:[#allocation11 + $0x68] sm:$0xff]  ;;  %v609_v60 = vld [vmem:[#allocation11 + $0x38] sm:$0xff] }
  0xba   : > { %968 = vmatprep.subr.mxu0 %v1359_v0  ;;  %915 = vmatpush3.msra.mxu1 %v419_v27  ;;  %v410_v51 = vld [vmem:[%s1616_s16] sm:$0xff]  ;;  %v611_v58 = vld [vmem:[#allocation11 + $0x48] sm:$0xff]  ;;  %v605_v1 = vld [vmem:[#allocation11 + $0x18] sm:$0xff] }
  0xbb   : > { %969 = vmatpush3.msra.mxu0 %v451_v28  ;;  %916 = vmatprep.subr.mxu1 %v434_v29  ;;  %v614_v55 = vld [vmem:[#allocation11 + $0x60] sm:$0xff]  ;;  %v608_v61 = vld [vmem:[#allocation11 + $0x30] sm:$0xff]  ;;  %v607_v62 = vld [vmem:[#allocation11 + $0x28] sm:$0xff] }
  0xbc   : > { %970 = vmatprep.subr.mxu0 %v1359_v0  ;;  %917 = vmatpush3.msra.mxu1 %v418_v30  ;;  %v610_v59 = vld [vmem:[#allocation11 + $0x40] sm:$0xff]  ;;  %v604_v2 = vld [vmem:[#allocation11 + $0x10] sm:$0xff]  ;;  %v603_v3 = vld [vmem:[#allocation11 + $0x8] sm:$0xff] }
  0xbd   : > { %971 = vmatpush3.msra.mxu0 %v450_v31  ;;  %918 = vmatprep.subr.mxu1 %v433_v32  ;;  %v606_v63 = vld [vmem:[#allocation11 + $0x20] sm:$0xff]  ;;  %v601_v5 = vld [vmem:[%s357_s26] sm:$0xff] }
  0xbe   : > { %972 = vmatprep.subr.mxu0 %v1359_v0  ;;  %919 = vmatpush3.msra.mxu1 %v417_v33  ;;  %v602_v4 = vld [vmem:[#allocation11] sm:$0xff] }
  0xbf   : > { %973 = vmatpush3.msra.mxu0 %v449_v34  ;;  %920 = vmatprep.subr.mxu1 %v432_v35  ;;  %v875_v13 = vld [vmem:[%s1727_s6] ss:$0 sm:$0xff] }
  0xc0   : > { %974 = vmatprep.subr.mxu0 %v1359_v0  ;;  %921 = vmatpush3.msra.mxu1 %v416_v36 }
  0xc1   : > { %975 = vmatpush3.msra.mxu0 %v448_v37  ;;  %922 = vmatprep.subr.mxu1 %v431_v38 }
  0xc2   : > { %976 = vmatprep.subr.mxu0 %v1359_v0  ;;  %923 = vmatpush3.msra.mxu1 %v415_v39 }
  0xc3   : > { %977 = vmatpush3.msra.mxu0 %v447_v40  ;;  %924 = vmatprep.subr.mxu1 %v430_v41 }
  0xc4   : > { %978 = vmatprep.subr.mxu0 %v1359_v0  ;;  %925 = vmatpush3.msra.mxu1 %v414_v42 }
  0xc5   : > { %979 = vmatpush3.msra.mxu0 %v446_v43  ;;  %926 = vmatprep.subr.mxu1 %v429_v44 }
  0xc6   : > { %980 = vmatprep.subr.mxu0 %v1359_v0  ;;  %927 = vmatpush3.msra.mxu1 %v413_v45 }
  0xc7   : > { %981 = vmatpush3.msra.mxu0 %v445_v46  ;;  %928 = vmatprep.subr.mxu1 %v428_v47 }
  0xc8   : > { %983 = vmatmul.mubr.f32.vlgmr.msra.gmra.mxu0 %v444_v48  ;;  %929 = vmatpush3.msra.mxu1 %v412_v49 }
  0xc9   : > { %595 = vmatprep.mubr.f32.mxu1 %v411_v50  ;;  %985 = vmatprep.subr.mxu0 %v1359_v0 }
  0xca   : > { %596 = vmatmul.mubr.f32.vlgmr.msra.gmra.mxu1 %v410_v51  ;;  %986 = vmatpush3.msra.mxu0 %v617_v52 }
  0xcb   : > { %987 = vmatprep.subr.mxu0 %v1359_v0  ;;  %1017 = vmatprep.mubr.msk.f32.mxu0 %vm1360_vm0, %v1359_v0 }
  0xcc   : > { %988 = vmatpush3.msra.mxu0 %v616_v53 }
  0xcd   : > { %989 = vmatprep.subr.mxu0 %v1359_v0 }
  0xce   : > { %990 = vmatpush3.msra.mxu0 %v615_v54 }
  0xcf   : > { %991 = vmatprep.subr.mxu0 %v1359_v0 }
  0xd0   : > { %992 = vmatpush3.msra.mxu0 %v614_v55 }
  0xd1   : > { %993 = vmatprep.subr.mxu0 %v1359_v0 }
  0xd2   : > { %994 = vmatpush3.msra.mxu0 %v613_v56 }
  0xd3   : > { %995 = vmatprep.subr.mxu0 %v1359_v0 }
  0xd4   : > { %996 = vmatpush3.msra.mxu0 %v612_v57 }
  0xd5   : > { %997 = vmatprep.subr.mxu0 %v1359_v0 }
  0xd6   : > { %998 = vmatpush3.msra.mxu0 %v611_v58 }
  0xd7   : > { %999 = vmatprep.subr.mxu0 %v1359_v0 }
  0xd8   : > { %1000 = vmatpush3.msra.mxu0 %v610_v59 }
  0xd9   : > { %1001 = vmatprep.subr.mxu0 %v1359_v0 }
  0xda   : > { %1002 = vmatpush3.msra.mxu0 %v609_v60 }
  0xdb   : > { %1003 = vmatprep.subr.mxu0 %v1359_v0 }
  0xdc   : > { %1004 = vmatpush3.msra.mxu0 %v608_v61 }
  0xdd   : > { %1005 = vmatprep.subr.mxu0 %v1359_v0 }
  0xde   : > { %1006 = vmatpush3.msra.mxu0 %v607_v62 }
  0xdf   : > { %1007 = vmatprep.subr.mxu0 %v1359_v0 }
  0xe0   : > { %1008 = vmatpush3.msra.mxu0 %v606_v63 }
  0xe1   : > { %1009 = vmatprep.subr.mxu0 %v1359_v0 }
  0xe2   : > { %1010 = vmatpush3.msra.mxu0 %v605_v1 }
  0xe3   : > { %1011 = vmatprep.subr.mxu0 %v1359_v0 }
  0xe4   : > { %1012 = vmatpush3.msra.mxu0 %v604_v2 }
  0xe5   : > { %1013 = vmatprep.subr.mxu0 %v1359_v0 }
  0xe6   : > { %1014 = vmatpush3.msra.mxu0 %v603_v3 }
  0xe7   : > { %1015 = vmatprep.subr.mxu0 %v1359_v0 }
  0xe8   : > { %1016 = vmatpush3.msra.mxu0 %v602_v4 }
  0xe9   : > { %1018 = vmatmul.mubr.f32.vlgmr.msra.gmra.mxu0 %v601_v5 }
 0x188   : > { %v527_v6 = vpop.f32.mrf.mxu0 }
 0x18a   : > { %v984_v7 = vpop.f32.mrf.mxu0  ;;  %v930_v8 = vpop.f32.mrf.mxu1 }
 0x18c   : > { %v931_v9 = vpop.f32.mrf.mxu1 }
 0x18d   : > { %v932_v10 = vadd.f32 %v931_v9, %v930_v8 }
 0x18f   : > { %v598_v11 = vadd.f32 %v932_v10, %v527_v6 }
 0x1a9   : > { %v684_v12 = vpop.f32.mrf.mxu0 }
 0x1aa   : > { %v688_v14 = vadd.f32 %v684_v12, %v598_v11 }
 0x1ab   : > { %v1019_v0 = vpop.f32.mrf.mxu0 }
 0x1ac   : > { %v696_v15 = vadd.f32 %v875_v13, %v688_v14 }
 0x1ae   : > { %697 = vst [vmem:[%s409_s13] sm:$0xff] %v696_v15 }
 0x1af   : > { %1286 = shalt.err (!%p1283_p3)
}
 0x1b0   : > { %s1287_s1 = scalar_lea.hbm %s710_s20, 128  ;;  %s1291_s16 = scalar_lea.hbm %s1728_s7, 256 }
 0x1b1   : > { %p1288_p5 = scmp.ne.s32.totalorder %s710_s20, %s1287_s1  ;;  %p1292_p2 = scmp.lt.s32.totalorder %s710_s20, %s1728_s7 }
 0x1b2   : > { %p1293_p13 = scmp.lt.s32.totalorder %s1291_s16, %s1287_s1 }
 0x1b3   : > { %p1289_p10 = pnand %p1288_p5, %p1776_p8 }
 0x1b4   : > { %p1294_p1 = por %p1293_p13, %p1292_p2 }
 0x1b5   : > { %p1290_p9 = pneg %p1289_p10 }
 0x1b7   : > { %p1295_p6 = pnand %p1294_p1, %p1290_p9 }
 0x1b9   : > { %1298 = shalt.err (!%p1295_p6)
}
 0x1ba   : > { %1038 = dma.vmem_to_hbm [thread:$0]  (%p1776_p8), %s713_s17, 128, %s710_s20, %s699_s4  }
 0x1bb PF: > { %s1777_s10 = sld [smem:[#allocation20_spill]]  ;;  %s724_s14 = sand.u32 1, %s1337_s24  }
 0x1bc   : > { %p1779_p12 = scmp.ge.s32.totalorder %s1349_s27, 2  ;;  %s725_s26 = scalar_lea.sflag [#allocation4], %s724_s14 }
 0x1c1   : > { %p1778_p11 = scmp.ne.s32.totalorder %s1777_s10, 0 }
 0x1c3   : > { %p1061_p4 = pnand %p1779_p12, %p1778_p11 }
 0x1c5   : > { %p1062_p7 = pneg %p1061_p4 }
 0x1c7   : > { %1332 = dma.done.wait (%p1062_p7), %s725_s26, 128  }
 0x1c8   : > { %1334 = vsyncadd (%p1062_p7), %s725_s26, 4294967168  ;;  %s1780_s27 = sld [smem:[#allocation21_spill]]  ;;  %s1783_s24 = smov %s1341_s25 }
 0x1c9   : > { %s1781_s30 = sld [smem:[#allocation19_spill]] }
 0x1ca   : > { %s1782_s26 = sld [smem:[#allocation22_spill]] }
 0x1ce   : > { %p25_p0 = scmp.ge.s32.totalorder %s1780_s27, 4  }
 0x1cf   : > { %s1784_s25 = smov %s1781_s30 }
 0x1d0   :  { %27 = sbr.rel (!%p25_p0) target bundleno = 13 (0xd), region = 129 }
 0x1d5   :  { %730 = vsyncpa [#allocation3], 1 }
 0x1d6   :  { %732 = vsyncpa [#allocation3 + $0x1], 1 }
 0x1d7   :  { %733 = vsyncpa [#allocation6], 1 }
 0x1d8   :  { %735 = vsyncpa [#allocation6 + $0x1], 1 }
 0x1d9   :  { %736 = vsyncpa [#allocation9], 1 }
 0x1da   :  { %737 = vsyncpa [#allocation12], 1 }
 0x1db   :  { %738 = vsyncpa [#allocation4], 1 }
 0x1dc   :  { %740 = vsyncpa [#allocation4 + $0x1], 1 }

</bundles_post_ra>
